<compile_context>
chip_gen: v6e
topology: v6e:2x2x1
jax: 0.10.0
libtpu: 0.0.40
codegen_flags: <defaults>
</compile_context>

<pallas_src>
import jax
import jax.numpy as jnp
from jax.experimental import pallas as pl
from jax.experimental.pallas import tpu as pltpu

LANE = 128
SUBLANE = 8


def _round_up(n, m):
    return ((n + m - 1) // m) * m


def _choose_tile(rows, tile_cap, min_tiles):
    """Pick a batch tile for `rows` (a multiple of 8).

    Prefers a tile that divides `rows` exactly (so no jnp.pad copy of x is
    needed); falls back to padding only when the divisor structure is bad.
    Returns (tile, rows_padded).
    """
    tile_cap = max(SUBLANE, (tile_cap // SUBLANE) * SUBLANE)
    ideal = min(tile_cap, max(SUBLANE, (rows // min_tiles) // SUBLANE * SUBLANE))
    m = rows // SUBLANE
    cap = ideal // SUBLANE
    for d in range(cap, 0, -1):
        if m % d == 0:
            tile = d * SUBLANE
            if 2 * tile >= ideal:       # close enough to the ideal tile: no pad
                return tile, rows
            break
    # Poor divisor structure (e.g. prime row count): accept one pad copy of x.
    return ideal, _round_up(rows, ideal)


def _fused_mlp_kernel(x_ref, w_ref, b_ref, o_ref):
    # One MXU matmul per batch tile: [tile_b, indim] @ [indim, outdim] (f32 acc),
    # plus a broadcast bias add.  Output block is lane-narrow (outdim=4) but the
    # HBM writeback stays dense (contiguous 16 B rows).
    acc = jnp.dot(x_ref[...], w_ref[...], preferred_element_type=jnp.float32)
    o_ref[...] = (acc + b_ref[...]).astype(o_ref.dtype)


def linear_mlp_forward(x, params, *, eps=1e-5, tile_b=4096, min_pallas_batch=64,
                       force_pallas=False):
    """LinearMLP forward; hot path is a single fused-matmul Pallas kernel."""
    w1, b1, gamma, beta, run_mean, run_var, w2, b2 = params

    # ---- JAX glue: fold eval-mode BN + both linears into one affine map ----
    inv_std = 1.0 / jnp.sqrt(run_var.astype(jnp.float32) + eps)
    scale = gamma.astype(jnp.float32) * inv_std                       # [nhidden]
    shift = beta.astype(jnp.float32) - run_mean.astype(jnp.float32) * scale
    w1f = w1.astype(jnp.float32)
    w2f = w2.astype(jnp.float32)
    w_fold = (w1f * scale[None, :]) @ w2f                             # [indim, outdim]
    b_fold = (b1.astype(jnp.float32) * scale + shift) @ w2f + b2.astype(jnp.float32)

    B, indim = x.shape
    outdim = w_fold.shape[1]
    x_f = x.astype(jnp.float32)

    # ---- tiny batches: kernel launch cost dwarfs ~KB of work; let XLA fuse a dot
    if B < min_pallas_batch and not force_pallas:
        out = (x_f @ w_fold + b_fold).astype(x.dtype)
        return jnp.squeeze(out)

    # ---- batch tiling ----
    rows = _round_up(B, SUBLANE)
    # v7x megacore: keep >= 2 grid steps when the batch is big enough to split
    # (neutral on v5e/v6e).
    min_tiles = 2 if rows >= 2048 else 1
    tile, B_pad = _choose_tile(rows, tile_b, min_tiles)

    if B_pad != B:
        # Only hit when B % 8 != 0 or the row count has no usable divisor.
        x_f = jnp.pad(x_f, ((0, B_pad - B), (0, 0)))

    b2d = b_fold.reshape(1, outdim)
    grid = (B_pad // tile,)

    # Advisory cost hint so XLA overlaps the fold/pad glue with the custom call.
    cost = pl.CostEstimate(
        flops=2 * B_pad * indim * outdim,
        transcendentals=0,
        bytes_accessed=4 * (B_pad * indim + indim * outdim + outdim + B_pad * outdim),
    )

    # NOTE: at tile_b=4096 the double-buffered, lane-padded VMEM footprint is
    # ~8 MiB, safely under v5e's 16 MiB default scoped VMEM.  If you push
    # tile_b past ~8K rows, add vmem_limit_bytes to CompilerParams.
    out = pl.pallas_call(
        _fused_mlp_kernel,
        out_shape=jax.ShapeDtypeStruct((B_pad, outdim), x.dtype),
        grid=grid,
        in_specs=[
            pl.BlockSpec((tile, indim), lambda i: (i, 0)),     # x: tiled over batch
            pl.BlockSpec((indim, outdim), lambda i: (0, 0)),   # fused weight, VMEM-resident
            pl.BlockSpec((1, outdim), lambda i: (0, 0)),       # fused bias, VMEM-resident
        ],
        out_specs=pl.BlockSpec((tile, outdim), lambda i: (i, 0)),
        compiler_params=pltpu.CompilerParams(
            dimension_semantics=("parallel",),  # batch tiles shard across v7x's 2 TCs
        ),
        cost_estimate=cost,
    )(x_f, w_fold, b2d)

    if B_pad != B:
        out = out[:B]
    # torch.squeeze: drop all size-1 dims
    return jnp.squeeze(out)


def init_params(key, indim, nhidden, outdim, dtype=jnp.float32):
    """Deterministic synthetic parameter init (shapes match nn.Linear/nn.BatchNorm1d)."""
    k1, k2, k3, k4, k5, k6, k7, k8 = jax.random.split(key, 8)
    # Linear(indim, nhidden): torch weight [nhidden, indim] -> stored transposed [indim, nhidden]
    w1 = jax.random.normal(k1, (indim, nhidden), dtype) * 0.1
    b1 = jax.random.normal(k2, (nhidden,), dtype) * 0.1
    # BatchNorm1d(nhidden) parameters + running stats
    gamma = 1.0 + 0.1 * jax.random.normal(k3, (nhidden,), dtype)
    beta = 0.1 * jax.random.normal(k4, (nhidden,), dtype)
    run_mean = 0.1 * jax.random.normal(k5, (nhidden,), dtype)
    run_var = 0.5 + jax.random.uniform(k6, (nhidden,), dtype)  # strictly positive
    # Linear(nhidden, outdim): stored transposed [nhidden, outdim]
    w2 = jax.random.normal(k7, (nhidden, outdim), dtype) * 0.1
    b2 = jax.random.normal(k8, (outdim,), dtype) * 0.1
    return (w1, b1, gamma, beta, run_mean, run_var, w2, b2)


def reference_forward(x, params, eps=1e-5):
    """Pure-JAX reference (un-folded, eval-mode BN) for correctness check."""
    w1, b1, gamma, beta, run_mean, run_var, w2, b2 = params
    h = x @ w1 + b1
    h = (h - run_mean) / jnp.sqrt(run_var + eps) * gamma + beta
    out = h @ w2 + b2
    return jnp.squeeze(out)


if __name__ == "__main__":
    # opt = {'n_input_dims': 16, 'n_hidden': 32, 'n_class': 4, 'batchnorm': True}
    B, INDIM, NHIDDEN, OUTDIM = 8, 16, 32, 4

    key = jax.random.PRNGKey(0)
    kx, kp, kx2 = jax.random.split(key, 3)
    params = init_params(kp, INDIM, NHIDDEN, OUTDIM)

    # Small (shipped) config: force the Pallas path (single 8-row tile, unpadded
    # 4-lane output block) and check against the un-folded reference.
    x = jax.random.normal(kx, (B, INDIM), jnp.float32)
    out = jax.block_until_ready(linear_mlp_forward(x, params, force_pallas=True))
    ref = reference_forward(x, params)
    assert out.shape == ref.shape, (out.shape, ref.shape)
    assert jnp.allclose(out, ref, atol=1e-4, rtol=1e-4), "mismatch vs reference (small batch, pallas)"

    # Default auto path for tiny batches short-circuits to a fused XLA dot.
    out_auto = jax.block_until_ready(linear_mlp_forward(x, params))
    assert jnp.allclose(out_auto, ref, atol=1e-4, rtol=1e-4), "mismatch vs reference (small batch, dot)"

    # Larger batch: multi-tile grid (tile_b=128 -> 4 batch tiles, no pad copy),
    # exercising the pipelined / parallel batch axis.
    x_big = jax.random.normal(kx2, (512, INDIM), jnp.float32)
    out_big = jax.block_until_ready(linear_mlp_forward(x_big, params, tile_b=128))
    ref_big = reference_forward(x_big, params)
    assert out_big.shape == ref_big.shape, (out_big.shape, ref_big.shape)
    assert jnp.allclose(out_big, ref_big, atol=1e-4, rtol=1e-4), "mismatch vs reference (big batch)"

    print("KERNEL_OK")
</pallas_src>

<mosaic_0001>
module attributes {stable_mosaic.version = 11 : i64} {
  func.func @_fused_mlp_kernel(%arg0: i32, %arg1: memref<8x16xf32, #tpu.memory_space<vmem>>, %arg2: memref<16x4xf32, #tpu.memory_space<vmem>>, %arg3: memref<1x4xf32, #tpu.memory_space<vmem>>, %arg4: memref<8x4xf32, #tpu.memory_space<vmem>>) attributes {dimension_semantics = [#tpu.dimension_semantics<parallel>], iteration_bounds = array<i64: 1>, scalar_prefetch = 0 : i64, scratch_operands = 0 : i64, tpu.core_type = #tpu.core_type<tc>, window_params = [{transform_indices = @transform_0, window_bounds = array<i64: 8, 16>}, {pipeline_mode = #tpu.pipeline_mode<synchronous>, transform_indices = @transform_1, window_bounds = array<i64: 16, 4>}, {pipeline_mode = #tpu.pipeline_mode<synchronous>, transform_indices = @transform_2, window_bounds = array<i64: 1, 4>}, {transform_indices = @transform_3, window_bounds = array<i64: 8, 4>}]} {
    %c0 = arith.constant 0 : index
    %c0_0 = arith.constant 0 : index
    %0 = vector.load %arg1[%c0, %c0_0] : memref<8x16xf32, #tpu.memory_space<vmem>>, vector<8x16xf32>
    %c0_1 = arith.constant 0 : index
    %c0_2 = arith.constant 0 : index
    %1 = vector.load %arg2[%c0_1, %c0_2] : memref<16x4xf32, #tpu.memory_space<vmem>>, vector<16x4xf32>
    %cst = arith.constant dense<0.000000e+00> : vector<8x4xf32>
    %2 = tpu.matmul %0, %1, %cst {dimension_numbers = #tpu.dot_dimension_numbers<[1], [0], [0], [1], [0, 0, 1, 1], [], []>} : vector<8x16xf32>, vector<16x4xf32>, vector<8x4xf32> -> vector<8x4xf32>
    %c0_3 = arith.constant 0 : index
    %c0_4 = arith.constant 0 : index
    %3 = vector.load %arg3[%c0_3, %c0_4] : memref<1x4xf32, #tpu.memory_space<vmem>>, vector<1x4xf32>
    %4 = vector.broadcast %3 : vector<1x4xf32> to vector<8x4xf32>
    %5 = arith.addf %2, %4 : vector<8x4xf32>
    %c0_5 = arith.constant 0 : index
    %c0_6 = arith.constant 0 : index
    %6 = vector.load %arg4[%c0_5, %c0_6] : memref<8x4xf32, #tpu.memory_space<vmem>>, vector<8x4xf32>
    tpu.vector_store %arg4[%c0_5, %c0_6], %5 {strides = array<i32>} : memref<8x4xf32, #tpu.memory_space<vmem>>, vector<8x4xf32>,
    return
  }
  func.func @transform_0(%arg0: i32) -> (i32, i32) {
    %c0_i32 = arith.constant 0 : i32
    %c0_i32_0 = arith.constant 0 : i32
    return %arg0, %c0_i32 : i32, i32
  }
  func.func @transform_1(%arg0: i32) -> (i32, i32) {
    %c0_i32 = arith.constant 0 : i32
    %c0_i32_0 = arith.constant 0 : i32
    %c0_i32_1 = arith.constant 0 : i32
    return %c0_i32, %c0_i32_0 : i32, i32
  }
  func.func @transform_2(%arg0: i32) -> (i32, i32) {
    %c0_i32 = arith.constant 0 : i32
    %c0_i32_0 = arith.constant 0 : i32
    %c0_i32_1 = arith.constant 0 : i32
    return %c0_i32, %c0_i32_0 : i32, i32
  }
  func.func @transform_3(%arg0: i32) -> (i32, i32) {
    %c0_i32 = arith.constant 0 : i32
    %c0_i32_0 = arith.constant 0 : i32
    return %arg0, %c0_i32 : i32, i32
  }
}

</mosaic_0001>

<bundles_post_ra>
// kernel: tpu_custom_call.1
= control target key start
LH: loop header
LB: loop body
LE: loop exit
PB: predicated region body
PF: predicated region fallthrough
CT: control target
= control target key end

     0   :  { %v118_v0 = vmov 0.0   ;;  %vm119_vm0 = vmmov 0   ;;  %vm24_vm1 = vcmask 130048   ;;  %vm98_vm2 = vcmask 31744   ;;  %s155_s1 = inlined_call_operand.vmem [shape: f32[16,4], index: 1, kind: input, shape index: {}]   ;;  %s156_s0 = inlined_call_operand.vmem [shape: f32[8,16], index: 0, kind: input, shape index: {}]   ;;  %s157_s2 = inlined_call_operand.vmem [shape: f32[1,4], index: 2, kind: input, shape index: {}]   ;;  %s158_s3 = inlined_call_operand.vmem [shape: f32[8,4], index: 3, kind: output, shape index: {}]  }
   0x1   :  { %109 = vmatprep.subr.mxu0 %v118_v0  ;;  %v16_v1 = vld [vmem:[%s155_s1 + $0x8] sm:$0xff]  ;;  %v15_v2 = vld [vmem:[%s155_s1] sm:$0xff]  ;;  %113 = vmatprep.mubr.msk.f32.mxu0 %vm119_vm0, %v118_v0 }
   0x2   :  { %110 = vmatpush3.msra.mxu0 %v16_v1  ;;  %v14_v3 = vld [vmem:[%s156_s0] sm:$0xff] }
   0x3   :  { %111 = vmatprep.subr.mxu0 %v118_v0  ;;  %v104_v4 = vld [vmem:[%s157_s2] ss:$0 sm:$0xff] }
   0x4   :  { %112 = vmatpush3.msra.mxu0 %v15_v2 }
   0x5   :  { %114 = vmatmul.mubr.msk.f32.vlgmr.msra.gmra.mxu0 %vm24_vm1, %v14_v3 }
  0xc5   :  { %v94_v5 = vpop.f32.mrf.mxu0 }
  0xc6   :  { %v95_v6 = vadd.f32 %v104_v4, %v94_v5 }
  0xc7   :  { %v115_v7 = vpop.f32.mrf.mxu0 }
  0xc8   :  { %99 = vst.msk [vmem:[%s158_s3] sm:$0xff] %vm98_vm2, %v95_v6 }

</bundles_post_ra>
